<compile_context>
chip_gen: v6e
topology: v6e:2x2x1
jax: 0.10.0
libtpu: 0.0.40
codegen_flags: <defaults>
</compile_context>

<pallas_src>
import functools

import jax
import jax.numpy as jnp
import numpy as np
from jax.experimental import pallas as pl
from jax.experimental.pallas import tpu as pltpu

EPS = 1e-5  # PyTorch InstanceNorm2d default eps (affine=False, no running stats)


def _basic_block_kernel(*refs, B, H, W, Cin, Cout, identity):
    """B samples per grid step, lane-packed (B, H, W*C) layout.

    refs (identity):      x_ref, b1_ref, b2_ref, pch_ref, o_ref
    refs (non-identity):  x_ref, b1_ref, b2_ref, pch_ref, ws_ref, o_ref

    x_ref  : (B, H, W*Cin)        input, lane-packed NHWC (f32)
    b1_ref : (3, W*Cin,  W*Cout)  conv1 Toeplitz slabs, one per H tap (bf16)
    b2_ref : (3, W*Cout, W*Cout)  conv2 Toeplitz slabs (bf16)
    pch_ref: (W*Cout, W*Cout)     1/(H*W) channel-averaging matrix (f32)
    ws_ref : (W*Cin, W*Cout)      kron(I_W, ws) 1x1-shortcut weights (bf16)
    o_ref  : (B, H, W*Cout)       output, lane-packed NHWC
    """
    if identity:
        x_ref, b1_ref, b2_ref, pch_ref, o_ref = refs
        ws_ref = None
    else:
        x_ref, b1_ref, b2_ref, pch_ref, ws_ref, o_ref = refs

    f32, bf16 = jnp.float32, jnp.bfloat16
    BH = B * H
    WCin, WCout = W * Cin, W * Cout

    x = x_ref[...].reshape(BH, WCin).astype(f32)        # (BH, W*Cin)
    x_bf = x.astype(bf16)                               # conv / shortcut LHS
    p_ch = pch_ref[...]                                 # (WCout, WCout) f32

    # Per-sample boundary-row masks for the H taps (tiny (BH, 1) iota work).
    row = jax.lax.broadcasted_iota(jnp.int32, (BH, 1), 0) % H
    not_top = row != 0          # row h=0 of each sample has no h-1 neighbour
    not_bot = row != H - 1      # row h=H-1 of each sample has no h+1 neighbour

    def conv3x3(z_bf, b_ref):
        # z_bf: (BH, W*C) bf16; b_ref: (3, W*C, W*Cout) bf16.  One MXU matmul
        # per H tap; the row shift moves to the XLU (pltpu.roll) + a mask.
        y0 = jnp.dot(z_bf, b_ref[0], preferred_element_type=f32)   # tap h-1
        y1 = jnp.dot(z_bf, b_ref[1], preferred_element_type=f32)   # tap h
        y2 = jnp.dot(z_bf, b_ref[2], preferred_element_type=f32)   # tap h+1
        yd = pltpu.roll(y0, shift=1, axis=0)         # row r <- y0[r-1]
        yu = pltpu.roll(y2, shift=BH - 1, axis=0)    # row r <- y2[r+1]
        return y1 + jnp.where(not_top, yd, 0.0) + jnp.where(not_bot, yu, 0.0)

    def instance_norm(a):
        # a: (BH, WCout) f32.  Segmented per-sample sums over H (sublane
        # reduce), then one small (B, WCout)@(WCout, WCout) matmul averages
        # over W and broadcasts per-channel stats back in the packed layout.
        a3 = a.reshape(B, H, WCout)
        s1 = jnp.sum(a3, axis=1)                                   # (B, WCout)
        s2 = jnp.sum(a3 * a3, axis=1)
        m = jnp.dot(s1, p_ch, preferred_element_type=f32)          # mean
        e2 = jnp.dot(s2, p_ch, preferred_element_type=f32)         # E[x^2]
        var = jnp.maximum(e2 - m * m, 0.0)                         # guard
        inv = jax.lax.rsqrt(var + EPS)
        return ((a3 - m[:, None, :]) * inv[:, None, :]).reshape(BH, WCout)

    # ---- conv1 -> InstanceNorm -> ReLU --------------------------------------
    out1 = jnp.maximum(instance_norm(conv3x3(x_bf, b1_ref)), 0.0)
    # ---- conv2 -> InstanceNorm ----------------------------------------------
    out2 = instance_norm(conv3x3(out1.astype(bf16), b2_ref))

    # ---- shortcut ------------------------------------------------------------
    if identity:
        sc = x                                                     # Cin == Cout
    else:
        sc = jnp.dot(x_bf, ws_ref[...], preferred_element_type=f32)  # 1x1 conv

    # ---- add + ReLU + lane-dense store --------------------------------------
    out = jnp.maximum(out2 + sc, 0.0)
    o_ref[...] = out.reshape(B, H, WCout).astype(o_ref.dtype)


def _conv_tap_weights(w_hwio, W):
    """Repack HWIO 3x3 weights into three (W*C, W*Cout) Toeplitz slabs.

    B[dh, j*C + k, w*Cout + c] = w[dh, j-w+1, k, c] (0 when the W tap falls in
    the zero padding), so that z @ B[dh] with z[h, j*C+k] = x[h, j, k] gives
    the dh-tap contribution of the padding=1 3x3 conv in packed (H, W*Cout)
    form.  The H-direction shift is applied in-kernel with pltpu.roll.
    """
    KH, KW, C, Cout = w_hwio.shape
    j = jnp.arange(W)[:, None]
    w = jnp.arange(W)[None, :]
    d = j - w + 1                                   # (W, W) W-direction tap
    valid = (d >= 0) & (d < KW)
    dcl = jnp.clip(d, 0, KW - 1)
    g = w_hwio[:, dcl, :, :]                        # (KH, j, w, C, Cout)
    g = jnp.where(valid[None, :, :, None, None], g, 0.0)
    g = jnp.transpose(g, (0, 1, 3, 2, 4))           # (KH, j, k, w, c)
    return g.reshape(KH, W * C, W * Cout)


def _channel_avg_matrix(W, Cout, H):
    """P[a, b] = 1/(H*W) iff a % Cout == b % Cout — built once, kept resident."""
    idx = np.arange(W * Cout)
    p = (idx[:, None] % Cout == idx[None, :] % Cout).astype(np.float32)
    return jnp.asarray(p / float(H * W))


def _choose_b_tile(N, H, target_rows=256, max_rows=1024):
    """Samples per grid step: fill the MXU M dim (aim >= target_rows rows)
    while keeping >= 2 grid steps when that costs no MXU fill (v7x shards
    'parallel' grid axes across its 2 TensorCores)."""
    divs = [d for d in range(1, N + 1) if N % d == 0]
    fill = [d for d in divs if target_rows <= d * H <= max_rows]
    if fill:
        b = min(fill)
    else:
        fit = [d for d in divs if d * H <= max_rows]
        b = max(fit) if fit else 1
    if N // b < 2:
        two = [d for d in divs if N // d >= 2 and d * H >= target_rows]
        if two:
            b = max(two)
    return b


def basic_block_forward_packed(x_lane, w1, w2, ws=None, *, H, W):
    """x_lane: (N, H, W*Cin) lane-packed NHWC.  Returns (N, H, W*Cout) packed.

    Preferred entry point for chained blocks: activations never leave the
    lane-packed layout, so there are no NCHW<->NHWC HBM round-trips.
    """
    N = x_lane.shape[0]
    Cin, Cout = w1.shape[2], w1.shape[3]
    identity = (Cin == Cout)           # PyTorch module: identity add when equal
    WCin, WCout = W * Cin, W * Cout

    b_tile = _choose_b_tile(N, H)
    n_steps = N // b_tile

    # Resident-weight VMEM guard (Toeplitz packing is O(W^2 * Cin * Cout)).
    resident = 2 * 3 * WCin * WCout + 2 * 3 * WCout * WCout + 4 * WCout * WCout
    if not identity:
        resident += 2 * WCin * WCout
    if resident > 48 * 1024 * 1024:
        # TODO(synk): tile the W*C contraction axis (extra "arbitrary" grid dim
        # + f32 accumulator scratch) or fall back to a W-tiled im2col path for
        # large W/C; resident Toeplitz weights would exceed v7x's 64 MiB VMEM.
        raise NotImplementedError(
            "Toeplitz-packed weights exceed the resident-VMEM budget; "
            "tiled fallback not implemented for these shapes.")
    act_bytes = b_tile * H * (WCin + WCout) * 4
    vmem_limit = int(min(60 << 20,
                         max(32 << 20, 2 * resident + 4 * act_bytes + (4 << 20))))

    # Weight preprocessing (once per call, tiny): Toeplitz slabs + bf16 cast.
    b1 = _conv_tap_weights(w1, W).astype(jnp.bfloat16)     # (3, W*Cin,  W*Cout)
    b2 = _conv_tap_weights(w2, W).astype(jnp.bfloat16)     # (3, W*Cout, W*Cout)
    p_ch = _channel_avg_matrix(W, Cout, H)                 # (W*Cout, W*Cout)

    kernel = functools.partial(_basic_block_kernel, B=b_tile, H=H, W=W,
                               Cin=Cin, Cout=Cout, identity=identity)

    in_specs = [
        pl.BlockSpec((b_tile, H, WCin), lambda n: (n, 0, 0)),
        pl.BlockSpec((3, WCin, WCout), lambda n: (0, 0, 0)),
        pl.BlockSpec((3, WCout, WCout), lambda n: (0, 0, 0)),
        pl.BlockSpec((WCout, WCout), lambda n: (0, 0)),
    ]
    args = [x_lane, b1, b2, p_ch]
    if not identity:
        ws_kron = jnp.kron(jnp.eye(W, dtype=jnp.float32),
                           ws.astype(jnp.float32)).astype(jnp.bfloat16)
        in_specs.append(pl.BlockSpec((WCin, WCout), lambda n: (0, 0)))
        args.append(ws_kron)

    return pl.pallas_call(
        kernel,
        out_shape=jax.ShapeDtypeStruct((N, H, WCout), x_lane.dtype),
        grid_spec=pltpu.PrefetchScalarGridSpec(
            num_scalar_prefetch=0,
            grid=(n_steps,),
            in_specs=in_specs,
            out_specs=pl.BlockSpec((b_tile, H, WCout), lambda n: (n, 0, 0)),
        ),
        compiler_params=pltpu.CompilerParams(
            dimension_semantics=("parallel",),
            vmem_limit_bytes=vmem_limit),
    )(*args)


@jax.jit
def basic_block_forward(x_nchw, w1, w2, ws=None):
    """PyTorch-boundary wrapper: x (N, Cin, H, W) f32, w1/w2 HWIO 3x3,
    ws (Cin, Cout) or None.  The entry/exit transposes are pure layout
    overhead; chained blocks should use basic_block_forward_packed directly."""
    N, Cin, H, W = x_nchw.shape
    Cout = w1.shape[-1]
    x_lane = jnp.transpose(x_nchw, (0, 2, 3, 1)).reshape(N, H, W * Cin)
    out_packed = basic_block_forward_packed(x_lane, w1, w2, ws, H=H, W=W)
    return jnp.transpose(out_packed.reshape(N, H, W, Cout), (0, 3, 1, 2))


def _reference_forward(x_nchw, w1, w2, ws=None):
    """Pure-JAX reference mirroring the PyTorch module (for validation)."""
    x = jnp.transpose(x_nchw, (0, 2, 3, 1))
    dn = ("NHWC", "HWIO", "NHWC")

    def conv3(z, w):
        return jax.lax.conv_general_dilated(
            z, w, window_strides=(1, 1), padding=((1, 1), (1, 1)),
            dimension_numbers=dn)

    def inorm(z):
        m = jnp.mean(z, axis=(1, 2), keepdims=True)
        v = jnp.mean((z - m) ** 2, axis=(1, 2), keepdims=True)
        return (z - m) * jax.lax.rsqrt(v + EPS)

    out = jax.nn.relu(inorm(conv3(x, w1)))
    out = inorm(conv3(out, w2))
    Cin, Cout = w1.shape[2], w1.shape[3]
    if Cin != Cout:
        out = out + jnp.einsum("nhwc,cd->nhwd", x, ws)
    else:
        out = out + x
    out = jax.nn.relu(out)
    return jnp.transpose(out, (0, 3, 1, 2))


if __name__ == "__main__":
    # ---- Case 1: inplanes != outplanes (1x1-conv shortcut path) -------------
    N, Cin, Cout, H, W = 2, 4, 8, 16, 16
    kx, k1, k2, ks = jax.random.split(jax.random.PRNGKey(0), 4)
    x = jax.random.normal(kx, (N, Cin, H, W), dtype=jnp.float32)
    w1 = jax.random.normal(k1, (3, 3, Cin, Cout), dtype=jnp.float32) * 0.1
    w2 = jax.random.normal(k2, (3, 3, Cout, Cout), dtype=jnp.float32) * 0.1
    ws = jax.random.normal(ks, (Cin, Cout), dtype=jnp.float32) * 0.1

    out = jax.block_until_ready(basic_block_forward(x, w1, w2, ws))
    ref = jax.block_until_ready(_reference_forward(x, w1, w2, ws))
    np.testing.assert_allclose(np.asarray(out), np.asarray(ref),
                               rtol=5e-2, atol=5e-2)

    # ---- Case 2: inplanes == outplanes (identity residual path) -------------
    Cin2 = Cout2 = 8
    kx2, k12, k22 = jax.random.split(jax.random.PRNGKey(1), 3)
    x2 = jax.random.normal(kx2, (N, Cin2, H, W), dtype=jnp.float32)
    w12 = jax.random.normal(k12, (3, 3, Cin2, Cout2), dtype=jnp.float32) * 0.1
    w22 = jax.random.normal(k22, (3, 3, Cout2, Cout2), dtype=jnp.float32) * 0.1

    out2 = jax.block_until_ready(basic_block_forward(x2, w12, w22, None))
    ref2 = jax.block_until_ready(_reference_forward(x2, w12, w22, None))
    np.testing.assert_allclose(np.asarray(out2), np.asarray(ref2),
                               rtol=5e-2, atol=5e-2)

    print("KERNEL_OK")
</pallas_src>

<mosaic_0001>
module attributes {stable_mosaic.version = 11 : i64} {
  func.func @_basic_block_kernel(%arg0: i32, %arg1: memref<2x16x64xf32, #tpu.memory_space<vmem>>, %arg2: memref<3x64x128xbf16, #tpu.memory_space<vmem>>, %arg3: memref<3x128x128xbf16, #tpu.memory_space<vmem>>, %arg4: memref<128x128xf32, #tpu.memory_space<vmem>>, %arg5: memref<64x128xbf16, #tpu.memory_space<vmem>>, %arg6: memref<2x16x128xf32, #tpu.memory_space<vmem>>) attributes {dimension_semantics = [#tpu.dimension_semantics<parallel>], iteration_bounds = array<i64: 1>, scalar_prefetch = 0 : i64, scratch_operands = 0 : i64, tpu.core_type = #tpu.core_type<tc>, window_params = [{transform_indices = @transform_0, window_bounds = array<i64: 2, 16, 64>}, {pipeline_mode = #tpu.pipeline_mode<synchronous>, transform_indices = @transform_1, window_bounds = array<i64: 3, 64, 128>}, {pipeline_mode = #tpu.pipeline_mode<synchronous>, transform_indices = @transform_2, window_bounds = array<i64: 3, 128, 128>}, {pipeline_mode = #tpu.pipeline_mode<synchronous>, transform_indices = @transform_3, window_bounds = array<i64: 128, 128>}, {pipeline_mode = #tpu.pipeline_mode<synchronous>, transform_indices = @transform_4, window_bounds = array<i64: 64, 128>}, {transform_indices = @transform_5, window_bounds = array<i64: 2, 16, 128>}]} {
    %c0 = arith.constant 0 : index
    %c0_0 = arith.constant 0 : index
    %c0_1 = arith.constant 0 : index
    %0 = vector.load %arg1[%c0, %c0_0, %c0_1] : memref<2x16x64xf32, #tpu.memory_space<vmem>>, vector<2x16x64xf32>
    %1 = vector.shape_cast %0 : vector<2x16x64xf32> to vector<32x64xf32>
    %2 = arith.truncf %1 : vector<32x64xf32> to vector<32x64xbf16>
    %c0_2 = arith.constant 0 : index
    %c0_3 = arith.constant 0 : index
    %3 = vector.load %arg4[%c0_2, %c0_3] : memref<128x128xf32, #tpu.memory_space<vmem>>, vector<128x128xf32>
    %4 = tpu.iota {dimensions = array<i32: 0>} : vector<32x1xi32>
    %c16_i32 = arith.constant 16 : i32
    %c0_i32 = arith.constant 0 : i32
    %5 = arith.cmpi eq, %c16_i32, %c0_i32 : i32
    %c1_i32 = arith.constant 1 : i32
    %6 = arith.select %5, %c1_i32, %c16_i32 : i32
    %7 = vector.broadcast %6 : i32 to vector<32x1xi32>
    %8 = arith.remsi %4, %7 : vector<32x1xi32>
    %c0_i32_4 = arith.constant 0 : i32
    %9 = vector.broadcast %c0_i32_4 : i32 to vector<32x1xi32>
    %10 = arith.cmpi ne, %8, %9 : vector<32x1xi32>
    %c0_i32_5 = arith.constant 0 : i32
    %11 = vector.broadcast %c0_i32_5 : i32 to vector<32x1xi32>
    %12 = arith.cmpi slt, %8, %11 : vector<32x1xi32>
    %c0_i32_6 = arith.constant 0 : i32
    %13 = arith.cmpi slt, %6, %c0_i32_6 : i32
    %14 = vector.broadcast %13 : i1 to vector<32x1xi1>
    %15 = vector.broadcast %14 : vector<32x1xi1> to vector<32x1xi1>
    %16 = arith.xori %12, %15 : vector<32x1xi1>
    %17 = arith.andi %16, %10 : vector<32x1xi1>
    %18 = vector.broadcast %6 : i32 to vector<32x1xi32>
    %19 = arith.addi %8, %18 : vector<32x1xi32>
    %20 = arith.select %17, %19, %8 : vector<32x1xi1>, vector<32x1xi32>
    %c0_i32_7 = arith.constant 0 : i32
    %21 = vector.broadcast %c0_i32_7 : i32 to vector<32x1xi32>
    %22 = arith.cmpi ne, %20, %21 : vector<32x1xi32>
    %c15_i32 = arith.constant 15 : i32
    %23 = vector.broadcast %c15_i32 : i32 to vector<32x1xi32>
    %24 = arith.cmpi ne, %20, %23 : vector<32x1xi32>
    %c0_8 = arith.constant 0 : index
    %c0_9 = arith.constant 0 : index
    %c0_10 = arith.constant 0 : index
    %25 = vector.load %arg2[%c0_8, %c0_9, %c0_10] : memref<3x64x128xbf16, #tpu.memory_space<vmem>>, vector<1x64x128xbf16>
    %26 = vector.shape_cast %25 : vector<1x64x128xbf16> to vector<64x128xbf16>
    %cst = arith.constant dense<0.000000e+00> : vector<32x128xf32>
    %27 = tpu.matmul %2, %26, %cst {dimension_numbers = #tpu.dot_dimension_numbers<[1], [0], [0], [1], [0, 0, 1, 1], [], []>} : vector<32x64xbf16>, vector<64x128xbf16>, vector<32x128xf32> -> vector<32x128xf32>
    %c1 = arith.constant 1 : index
    %c0_11 = arith.constant 0 : index
    %c0_12 = arith.constant 0 : index
    %28 = vector.load %arg2[%c1, %c0_11, %c0_12] : memref<3x64x128xbf16, #tpu.memory_space<vmem>>, vector<1x64x128xbf16>
    %29 = vector.shape_cast %28 : vector<1x64x128xbf16> to vector<64x128xbf16>
    %cst_13 = arith.constant dense<0.000000e+00> : vector<32x128xf32>
    %30 = tpu.matmul %2, %29, %cst_13 {dimension_numbers = #tpu.dot_dimension_numbers<[1], [0], [0], [1], [0, 0, 1, 1], [], []>} : vector<32x64xbf16>, vector<64x128xbf16>, vector<32x128xf32> -> vector<32x128xf32>
    %c2 = arith.constant 2 : index
    %c0_14 = arith.constant 0 : index
    %c0_15 = arith.constant 0 : index
    %31 = vector.load %arg2[%c2, %c0_14, %c0_15] : memref<3x64x128xbf16, #tpu.memory_space<vmem>>, vector<1x64x128xbf16>
    %32 = vector.shape_cast %31 : vector<1x64x128xbf16> to vector<64x128xbf16>
    %cst_16 = arith.constant dense<0.000000e+00> : vector<32x128xf32>
    %33 = tpu.matmul %2, %32, %cst_16 {dimension_numbers = #tpu.dot_dimension_numbers<[1], [0], [0], [1], [0, 0, 1, 1], [], []>} : vector<32x64xbf16>, vector<64x128xbf16>, vector<32x128xf32> -> vector<32x128xf32>
    %c1_i32_17 = arith.constant 1 : i32
    %34 = tpu.dynamic_rotate %27 by %c1_i32_17 dim 0 : vector<32x128xf32>, i32 -> vector<32x128xf32>
    %c31_i32 = arith.constant 31 : i32
    %35 = tpu.dynamic_rotate %33 by %c31_i32 dim 0 : vector<32x128xf32>, i32 -> vector<32x128xf32>
    %cst_18 = arith.constant 0.000000e+00 : f32
    %36 = vector.shape_cast %22 : vector<32x1xi1> to vector<32x1xi1>
    %37 = vector.broadcast %36 : vector<32x1xi1> to vector<32x128xi1>
    %38 = vector.broadcast %cst_18 : f32 to vector<32x128xf32>
    %39 = arith.select %37, %34, %38 : vector<32x128xi1>, vector<32x128xf32>
    %40 = arith.addf %30, %39 : vector<32x128xf32>
    %cst_19 = arith.constant 0.000000e+00 : f32
    %41 = vector.shape_cast %24 : vector<32x1xi1> to vector<32x1xi1>
    %42 = vector.broadcast %41 : vector<32x1xi1> to vector<32x128xi1>
    %43 = vector.broadcast %cst_19 : f32 to vector<32x128xf32>
    %44 = arith.select %42, %35, %43 : vector<32x128xi1>, vector<32x128xf32>
    %45 = arith.addf %40, %44 : vector<32x128xf32>
    %46 = vector.shape_cast %45 : vector<32x128xf32> to vector<2x16x128xf32>
    %cst_20 = arith.constant dense<0.000000e+00> : vector<2x128xf32>
    %47 = vector.multi_reduction <add>, %46, %cst_20 [1] : vector<2x16x128xf32> to vector<2x128xf32>
    %48 = arith.mulf %46, %46 : vector<2x16x128xf32>
    %cst_21 = arith.constant dense<0.000000e+00> : vector<2x128xf32>
    %49 = vector.multi_reduction <add>, %48, %cst_21 [1] : vector<2x16x128xf32> to vector<2x128xf32>
    %cst_22 = arith.constant dense<0.000000e+00> : vector<2x128xf32>
    %50 = tpu.matmul %47, %3, %cst_22 {dimension_numbers = #tpu.dot_dimension_numbers<[1], [0], [0], [1], [0, 0, 1, 1], [], []>} : vector<2x128xf32>, vector<128x128xf32>, vector<2x128xf32> -> vector<2x128xf32>
    %cst_23 = arith.constant dense<0.000000e+00> : vector<2x128xf32>
    %51 = tpu.matmul %49, %3, %cst_23 {dimension_numbers = #tpu.dot_dimension_numbers<[1], [0], [0], [1], [0, 0, 1, 1], [], []>} : vector<2x128xf32>, vector<128x128xf32>, vector<2x128xf32> -> vector<2x128xf32>
    %52 = arith.mulf %50, %50 : vector<2x128xf32>
    %53 = arith.subf %51, %52 : vector<2x128xf32>
    %cst_24 = arith.constant 0.000000e+00 : f32
    %54 = vector.broadcast %cst_24 : f32 to vector<2x128xf32>
    %55 = arith.maximumf %53, %54 : vector<2x128xf32>
    %cst_25 = arith.constant 9.99999974E-6 : f32
    %56 = vector.broadcast %cst_25 : f32 to vector<2x128xf32>
    %57 = arith.addf %55, %56 : vector<2x128xf32>
    %58 = math.rsqrt %57 : vector<2x128xf32>
    %59 = vector.shape_cast %50 : vector<2x128xf32> to vector<2x1x128xf32>
    %60 = vector.broadcast %59 : vector<2x1x128xf32> to vector<2x16x128xf32>
    %61 = arith.subf %46, %60 : vector<2x16x128xf32>
    %62 = vector.shape_cast %58 : vector<2x128xf32> to vector<2x1x128xf32>
    %63 = vector.broadcast %62 : vector<2x1x128xf32> to vector<2x16x128xf32>
    %64 = arith.mulf %61, %63 : vector<2x16x128xf32>
    %65 = vector.shape_cast %64 : vector<2x16x128xf32> to vector<32x128xf32>
    %cst_26 = arith.constant 0.000000e+00 : f32
    %66 = vector.broadcast %cst_26 : f32 to vector<32x128xf32>
    %67 = arith.maximumf %65, %66 : vector<32x128xf32>
    %68 = arith.truncf %67 : vector<32x128xf32> to vector<32x128xbf16>
    %c0_27 = arith.constant 0 : index
    %c0_28 = arith.constant 0 : index
    %c0_29 = arith.constant 0 : index
    %69 = vector.load %arg3[%c0_27, %c0_28, %c0_29] : memref<3x128x128xbf16, #tpu.memory_space<vmem>>, vector<1x128x128xbf16>
    %70 = vector.shape_cast %69 : vector<1x128x128xbf16> to vector<128x128xbf16>
    %cst_30 = arith.constant dense<0.000000e+00> : vector<32x128xf32>
    %71 = tpu.matmul %68, %70, %cst_30 {dimension_numbers = #tpu.dot_dimension_numbers<[1], [0], [0], [1], [0, 0, 1, 1], [], []>} : vector<32x128xbf16>, vector<128x128xbf16>, vector<32x128xf32> -> vector<32x128xf32>
    %c1_31 = arith.constant 1 : index
    %c0_32 = arith.constant 0 : index
    %c0_33 = arith.constant 0 : index
    %72 = vector.load %arg3[%c1_31, %c0_32, %c0_33] : memref<3x128x128xbf16, #tpu.memory_space<vmem>>, vector<1x128x128xbf16>
    %73 = vector.shape_cast %72 : vector<1x128x128xbf16> to vector<128x128xbf16>
    %cst_34 = arith.constant dense<0.000000e+00> : vector<32x128xf32>
    %74 = tpu.matmul %68, %73, %cst_34 {dimension_numbers = #tpu.dot_dimension_numbers<[1], [0], [0], [1], [0, 0, 1, 1], [], []>} : vector<32x128xbf16>, vector<128x128xbf16>, vector<32x128xf32> -> vector<32x128xf32>
    %c2_35 = arith.constant 2 : index
    %c0_36 = arith.constant 0 : index
    %c0_37 = arith.constant 0 : index
    %75 = vector.load %arg3[%c2_35, %c0_36, %c0_37] : memref<3x128x128xbf16, #tpu.memory_space<vmem>>, vector<1x128x128xbf16>
    %76 = vector.shape_cast %75 : vector<1x128x128xbf16> to vector<128x128xbf16>
    %cst_38 = arith.constant dense<0.000000e+00> : vector<32x128xf32>
    %77 = tpu.matmul %68, %76, %cst_38 {dimension_numbers = #tpu.dot_dimension_numbers<[1], [0], [0], [1], [0, 0, 1, 1], [], []>} : vector<32x128xbf16>, vector<128x128xbf16>, vector<32x128xf32> -> vector<32x128xf32>
    %c1_i32_39 = arith.constant 1 : i32
    %78 = tpu.dynamic_rotate %71 by %c1_i32_39 dim 0 : vector<32x128xf32>, i32 -> vector<32x128xf32>
    %c31_i32_40 = arith.constant 31 : i32
    %79 = tpu.dynamic_rotate %77 by %c31_i32_40 dim 0 : vector<32x128xf32>, i32 -> vector<32x128xf32>
    %cst_41 = arith.constant 0.000000e+00 : f32
    %80 = vector.shape_cast %22 : vector<32x1xi1> to vector<32x1xi1>
    %81 = vector.broadcast %80 : vector<32x1xi1> to vector<32x128xi1>
    %82 = vector.broadcast %cst_41 : f32 to vector<32x128xf32>
    %83 = arith.select %81, %78, %82 : vector<32x128xi1>, vector<32x128xf32>
    %84 = arith.addf %74, %83 : vector<32x128xf32>
    %cst_42 = arith.constant 0.000000e+00 : f32
    %85 = vector.shape_cast %24 : vector<32x1xi1> to vector<32x1xi1>
    %86 = vector.broadcast %85 : vector<32x1xi1> to vector<32x128xi1>
    %87 = vector.broadcast %cst_42 : f32 to vector<32x128xf32>
    %88 = arith.select %86, %79, %87 : vector<32x128xi1>, vector<32x128xf32>
    %89 = arith.addf %84, %88 : vector<32x128xf32>
    %90 = vector.shape_cast %89 : vector<32x128xf32> to vector<2x16x128xf32>
    %cst_43 = arith.constant dense<0.000000e+00> : vector<2x128xf32>
    %91 = vector.multi_reduction <add>, %90, %cst_43 [1] : vector<2x16x128xf32> to vector<2x128xf32>
    %92 = arith.mulf %90, %90 : vector<2x16x128xf32>
    %cst_44 = arith.constant dense<0.000000e+00> : vector<2x128xf32>
    %93 = vector.multi_reduction <add>, %92, %cst_44 [1] : vector<2x16x128xf32> to vector<2x128xf32>
    %cst_45 = arith.constant dense<0.000000e+00> : vector<2x128xf32>
    %94 = tpu.matmul %91, %3, %cst_45 {dimension_numbers = #tpu.dot_dimension_numbers<[1], [0], [0], [1], [0, 0, 1, 1], [], []>} : vector<2x128xf32>, vector<128x128xf32>, vector<2x128xf32> -> vector<2x128xf32>
    %cst_46 = arith.constant dense<0.000000e+00> : vector<2x128xf32>
    %95 = tpu.matmul %93, %3, %cst_46 {dimension_numbers = #tpu.dot_dimension_numbers<[1], [0], [0], [1], [0, 0, 1, 1], [], []>} : vector<2x128xf32>, vector<128x128xf32>, vector<2x128xf32> -> vector<2x128xf32>
    %96 = arith.mulf %94, %94 : vector<2x128xf32>
    %97 = arith.subf %95, %96 : vector<2x128xf32>
    %cst_47 = arith.constant 0.000000e+00 : f32
    %98 = vector.broadcast %cst_47 : f32 to vector<2x128xf32>
    %99 = arith.maximumf %97, %98 : vector<2x128xf32>
    %cst_48 = arith.constant 9.99999974E-6 : f32
    %100 = vector.broadcast %cst_48 : f32 to vector<2x128xf32>
    %101 = arith.addf %99, %100 : vector<2x128xf32>
    %102 = math.rsqrt %101 : vector<2x128xf32>
    %103 = vector.shape_cast %94 : vector<2x128xf32> to vector<2x1x128xf32>
    %104 = vector.broadcast %103 : vector<2x1x128xf32> to vector<2x16x128xf32>
    %105 = arith.subf %90, %104 : vector<2x16x128xf32>
    %106 = vector.shape_cast %102 : vector<2x128xf32> to vector<2x1x128xf32>
    %107 = vector.broadcast %106 : vector<2x1x128xf32> to vector<2x16x128xf32>
    %108 = arith.mulf %105, %107 : vector<2x16x128xf32>
    %109 = vector.shape_cast %108 : vector<2x16x128xf32> to vector<32x128xf32>
    %c0_49 = arith.constant 0 : index
    %c0_50 = arith.constant 0 : index
    %110 = vector.load %arg5[%c0_49, %c0_50] : memref<64x128xbf16, #tpu.memory_space<vmem>>, vector<64x128xbf16>
    %cst_51 = arith.constant dense<0.000000e+00> : vector<32x128xf32>
    %111 = tpu.matmul %2, %110, %cst_51 {dimension_numbers = #tpu.dot_dimension_numbers<[1], [0], [0], [1], [0, 0, 1, 1], [], []>} : vector<32x64xbf16>, vector<64x128xbf16>, vector<32x128xf32> -> vector<32x128xf32>
    %112 = arith.addf %109, %111 : vector<32x128xf32>
    %cst_52 = arith.constant 0.000000e+00 : f32
    %113 = vector.broadcast %cst_52 : f32 to vector<32x128xf32>
    %114 = arith.maximumf %112, %113 : vector<32x128xf32>
    %115 = vector.shape_cast %114 : vector<32x128xf32> to vector<2x16x128xf32>
    %c0_53 = arith.constant 0 : index
    %c0_54 = arith.constant 0 : index
    %c0_55 = arith.constant 0 : index
    %116 = vector.load %arg6[%c0_53, %c0_54, %c0_55] : memref<2x16x128xf32, #tpu.memory_space<vmem>>, vector<2x16x128xf32>
    tpu.vector_store %arg6[%c0_53, %c0_54, %c0_55], %115 {strides = array<i32>} : memref<2x16x128xf32, #tpu.memory_space<vmem>>, vector<2x16x128xf32>,
    return
  }
  func.func @transform_0(%arg0: i32) -> (i32, i32, i32) {
    %c0_i32 = arith.constant 0 : i32
    %c0_i32_0 = arith.constant 0 : i32
    %c0_i32_1 = arith.constant 0 : i32
    return %arg0, %c0_i32, %c0_i32_0 : i32, i32, i32
  }
  func.func @transform_1(%arg0: i32) -> (i32, i32, i32) {
    %c0_i32 = arith.constant 0 : i32
    %c0_i32_0 = arith.constant 0 : i32
    %c0_i32_1 = arith.constant 0 : i32
    %c0_i32_2 = arith.constant 0 : i32
    return %c0_i32, %c0_i32_0, %c0_i32_1 : i32, i32, i32
  }
  func.func @transform_2(%arg0: i32) -> (i32, i32, i32) {
    %c0_i32 = arith.constant 0 : i32
    %c0_i32_0 = arith.constant 0 : i32
    %c0_i32_1 = arith.constant 0 : i32
    %c0_i32_2 = arith.constant 0 : i32
    return %c0_i32, %c0_i32_0, %c0_i32_1 : i32, i32, i32
  }
  func.func @transform_3(%arg0: i32) -> (i32, i32) {
    %c0_i32 = arith.constant 0 : i32
    %c0_i32_0 = arith.constant 0 : i32
    %c0_i32_1 = arith.constant 0 : i32
    return %c0_i32, %c0_i32_0 : i32, i32
  }
  func.func @transform_4(%arg0: i32) -> (i32, i32) {
    %c0_i32 = arith.constant 0 : i32
    %c0_i32_0 = arith.constant 0 : i32
    %c0_i32_1 = arith.constant 0 : i32
    return %c0_i32, %c0_i32_0 : i32, i32
  }
  func.func @transform_5(%arg0: i32) -> (i32, i32, i32) {
    %c0_i32 = arith.constant 0 : i32
    %c0_i32_0 = arith.constant 0 : i32
    %c0_i32_1 = arith.constant 0 : i32
    return %arg0, %c0_i32, %c0_i32_0 : i32, i32, i32
  }
}

</mosaic_0001>

<bundles_post_ra>
// kernel: basic_block_forward.1
= control target key start
LH: loop header
LB: loop body
LE: loop exit
PB: predicated region body
PF: predicated region fallthrough
CT: control target
= control target key end

     0   :  { %vm136_vm0 = vcmask 523264   ;;  %v1906_v18 = vmov 0.0   ;;  %vm1907_vm1 = vmmov 0   ;;  %v43_v35 = vlaneseq  ;;  %s2473_s1 = inlined_call_operand.vmem [shape: bf16[3,64,128], index: 1, kind: input, shape index: {}]   ;;  %s2474_s0 = inlined_call_operand.vmem [shape: f32[2,16,64], index: 0, kind: input, shape index: {}]   ;;  %s2475_s3 = inlined_call_operand.vmem [shape: f32[128,128], index: 3, kind: input, shape index: {}]   ;;  %s2476_s2 = inlined_call_operand.vmem [shape: bf16[3,128,128], index: 2, kind: input, shape index: {}]   ;;  %s2477_s4 = inlined_call_operand.vmem [shape: bf16[64,128], index: 4, kind: input, shape index: {}]   ;;  %s2478_s5 = inlined_call_operand.vmem [shape: f32[2,16,128], index: 5, kind: output, shape index: {}]  }
   0x1   :  { %v1862_v0 = vld [vmem:[%s2473_s1 + $0x18] sm:$0xff]   ;;  %v1863_v1 = vld [vmem:[%s2473_s1 + $0x10] sm:$0xff]   ;;  %v1864_v3 = vld [vmem:[%s2473_s1 + $0x8] sm:$0xff]   ;;  %vm436_vm8 = vcmask 1041409  }
   0x2   :  { %1611 = vmatprep.subr.bf16.mxu0 %v1862_v0  ;;  %v1865_v2 = vld [vmem:[%s2473_s1 + $0x58] sm:$0xff]   ;;  %v1867_v4 = vld [vmem:[%s2473_s1 + $0x50] sm:$0xff]   ;;  %v21_v5 = vld [vmem:[%s2474_s0] sm:$0xff]  ;;  %v2151_v37 = vshrl.u32 %v43_v35, 7 }
   0x3   :  { %1612 = vmatpush3.bf16.msra.mxu0 %v1862_v0  ;;  %1623 = vmatprep.subr.bf16.mxu1 %v1865_v2  ;;  %v22_v6 = vld [vmem:[%s2474_s0 + $0x8] sm:$0xff]  ;;  %v1866_v7 = vld [vmem:[%s2473_s1] sm:$0xff]   ;;  %v23_v10 = vld [vmem:[%s2474_s0 + $0x10] sm:$0xff] }
   0x4   :  { %1613 = vmatprep.subr.bf16.mxu0 %v1863_v1  ;;  %1624 = vmatpush3.bf16.msra.mxu1 %v1865_v2  ;;  %v1963_v8 = vpack.c.bf16 %v22_v6, %v21_v5  ;;  %v1868_v9 = vld [vmem:[%s2473_s1 + $0x48] sm:$0xff]   ;;  %v24_v11 = vld [vmem:[%s2474_s0 + $0x18] sm:$0xff]  ;;  %v1870_v12 = vld [vmem:[%s2473_s1 + $0x40] sm:$0xff]   ;;  %v46_v41 = vadd.s32 16, %v2151_v37  ;;  %v52_v47 = vand.u32 15, %v2151_v37  ;;  %v47_v50 = vadd.s32 24, %v2151_v37 }
   0x5   :  { %1625 = vmatprep.subr.bf16.mxu1 %v1867_v4  ;;  %v1869_v13 = vld [vmem:[%s2473_s1 + $0x38] sm:$0xff]   ;;  %v1984_v14 = vpack.c.bf16 %v24_v11, %v23_v10  ;;  %v1871_v15 = vld [vmem:[%s2473_s1 + $0x30] sm:$0xff]   ;;  %v1872_v16 = vld [vmem:[%s2473_s1 + $0x28] sm:$0xff]   ;;  %vm287_vm2 = vcmp.lt.s32.totalorder %v2151_v37, 1  ;;  %v45_v51 = vadd.s32 8, %v2151_v37  ;;  %vm296_vm5 = vcmp.lt.s32.totalorder %v2151_v37, 7 }
   0x6   :  { %1619 = vmatprep.mubr.msk.bf16.mxu0 %vm136_vm0, %v1963_v8  ;;  %1631 = vmatprep.mubr.msk.bf16.mxu1 %vm136_vm0, %v1963_v8  ;;  %v1873_v17 = vld [vmem:[%s2473_s1 + $0x20] sm:$0xff]   ;;  %v2007_v19 = vld [vmem:[%s2475_s3 + $0x78] sm:$0xff]  ;;  %v2013_v20 = vld [vmem:[%s2475_s3 + $0x70] sm:$0xff]  ;;  %v66_v45 = vand.u32 15, %v46_v41  ;;  %vm2164_vm4 = vcmp.ne.s32.totalorder %v52_v47, 0  ;;  %v73_v61 = vand.u32 15, %v47_v50 }
   0x7   :  { %1614 = vmatpush3.bf16.msra.mxu0 %v1863_v1  ;;  %v2022_v21 = vld [vmem:[%s2475_s3 + $0x68] sm:$0xff]  ;;  %v2035_v22 = vld [vmem:[%s2475_s3 + $0x60] sm:$0xff]  ;;  %v2043_v23 = vld [vmem:[%s2475_s3 + $0x58] sm:$0xff]  ;;  %v59_v0 = vand.u32 15, %v45_v51 }
   0x8   :  { %1615 = vmatprep.subr.bf16.mxu0 %v1864_v3  ;;  %1626 = vmatpush3.bf16.msra.mxu1 %v1867_v4  ;;  %v2052_v24 = vld [vmem:[%s2475_s3 + $0x50] sm:$0xff]  ;;  %v2061_v25 = vld [vmem:[%s2475_s3 + $0x48] sm:$0xff]  ;;  %v2070_v26 = vld [vmem:[%s2475_s3 + $0x40] sm:$0xff]  ;;  %vm2158_vm3 = vcmp.ne.s32.totalorder %v66_v45, 0  ;;  %vm2177_vm6 = vcmp.ne.s32.totalorder %v73_v61, 15 }
   0x9   :  { %1627 = vmatprep.subr.bf16.mxu1 %v1868_v9  ;;  %v2079_v27 = vld [vmem:[%s2475_s3 + $0x38] sm:$0xff]  ;;  %v2088_v28 = vld [vmem:[%s2475_s3 + $0x30] sm:$0xff]  ;;  %v2097_v29 = vld [vmem:[%s2475_s3 + $0x28] sm:$0xff]  ;;  %vm2185_vm7 = vcmp.ne.s32.totalorder %v59_v0, 15 }
   0xa   :  { %v2106_v30 = vld [vmem:[%s2475_s3 + $0x20] sm:$0xff]  ;;  %v2113_v31 = vld [vmem:[%s2475_s3 + $0x18] sm:$0xff]  ;;  %v2121_v32 = vld [vmem:[%s2475_s3 + $0x10] sm:$0xff] }
   0xb   :  { %1616 = vmatpush3.bf16.msra.mxu0 %v1864_v3  ;;  %v2130_v33 = vld [vmem:[%s2475_s3 + $0x8] sm:$0xff]  ;;  %v2139_v34 = vld [vmem:[%s2475_s3] sm:$0xff] }
   0xc   :  { %1617 = vmatprep.subr.bf16.mxu0 %v1866_v7  ;;  %1628 = vmatpush3.bf16.msra.mxu1 %v1868_v9 }
   0xd   :  { %1629 = vmatprep.subr.bf16.mxu1 %v1870_v12 }
   0xf   :  { %1618 = vmatpush3.bf16.msra.mxu0 %v1866_v7 }
  0x10   :  { %1635 = vmatprep.subr.bf16.mxu0 %v1869_v13  ;;  %1630 = vmatpush3.bf16.msra.mxu1 %v1870_v12 }
  0x11   :  { %1647 = vmatprep.subr.mxu1 %v1906_v18 }
  0x12   :  { %1620 = vmatmul.mubr.msk.bf16.vlgmr.msra.gmra.mxu0 %vm136_vm0, %v1984_v14 }
  0x13   :  { %1636 = vmatpush3.bf16.msra.mxu0 %v1869_v13  ;;  %1643 = vmatprep.mubr.msk.bf16.mxu0 %vm136_vm0, %v1963_v8 }
  0x14   :  { %1637 = vmatprep.subr.bf16.mxu0 %v1871_v15  ;;  %1632 = vmatmul.mubr.msk.bf16.vlgmr.msra.gmra.mxu1 %vm136_vm0, %v1984_v14 }
  0x15   :  { %1648 = vmatpush3.msra.mxu1 %v2007_v19  ;;  %1679 = vmatprep.mubr.msk.f32.mxu1 %vm1907_vm1, %v1906_v18 }
  0x16   :  { %1649 = vmatprep.subr.mxu1 %v1906_v18 }
  0x17   :  { %1638 = vmatpush3.bf16.msra.mxu0 %v1871_v15  ;;  %1650 = vmatpush3.msra.mxu1 %v2013_v20 }
  0x18   :  { %1639 = vmatprep.subr.bf16.mxu0 %v1872_v16  ;;  %1651 = vmatprep.subr.mxu1 %v1906_v18 }
  0x19   :  { %1652 = vmatpush3.msra.mxu1 %v2022_v21 }
  0x1a   :  { %1653 = vmatprep.subr.mxu1 %v1906_v18 }
  0x1b   :  { %1640 = vmatpush3.bf16.msra.mxu0 %v1872_v16  ;;  %1654 = vmatpush3.msra.mxu1 %v2035_v22 }
  0x1c   :  { %1641 = vmatprep.subr.bf16.mxu0 %v1873_v17  ;;  %1655 = vmatprep.subr.mxu1 %v1906_v18 }
  0x1d   :  { %1656 = vmatpush3.msra.mxu1 %v2043_v23 }
  0x1e   :  { %1657 = vmatprep.subr.mxu1 %v1906_v18 }
  0x1f   :  { %1642 = vmatpush3.bf16.msra.mxu0 %v1873_v17  ;;  %1658 = vmatpush3.msra.mxu1 %v2052_v24 }
  0x20   :  { %1682 = vmatprep.subr.mxu0 %v1906_v18  ;;  %1659 = vmatprep.subr.mxu1 %v1906_v18 }
  0x21   :  { %1660 = vmatpush3.msra.mxu1 %v2061_v25 }
  0x22   :  { %1644 = vmatmul.mubr.msk.bf16.vlgmr.msra.gmra.mxu0 %vm136_vm0, %v1984_v14  ;;  %1661 = vmatprep.subr.mxu1 %v1906_v18 }
  0x23   :  { %1683 = vmatpush3.msra.mxu0 %v2007_v19  ;;  %1662 = vmatpush3.msra.mxu1 %v2070_v26 }
  0x24   :  { %1684 = vmatprep.subr.mxu0 %v1906_v18  ;;  %1663 = vmatprep.subr.mxu1 %v1906_v18 }
  0x25   :  { %1685 = vmatpush3.msra.mxu0 %v2013_v20  ;;  %1664 = vmatpush3.msra.mxu1 %v2079_v27 }
  0x26   :  { %1686 = vmatprep.subr.mxu0 %v1906_v18  ;;  %1665 = vmatprep.subr.mxu1 %v1906_v18 }
  0x27   :  { %1687 = vmatpush3.msra.mxu0 %v2022_v21  ;;  %1666 = vmatpush3.msra.mxu1 %v2088_v28 }
  0x28   :  { %1688 = vmatprep.subr.mxu0 %v1906_v18  ;;  %1667 = vmatprep.subr.mxu1 %v1906_v18 }
  0x29   :  { %1689 = vmatpush3.msra.mxu0 %v2035_v22  ;;  %1668 = vmatpush3.msra.mxu1 %v2097_v29 }
  0x2a   :  { %1690 = vmatprep.subr.mxu0 %v1906_v18  ;;  %1669 = vmatprep.subr.mxu1 %v1906_v18 }
  0x2b   :  { %1691 = vmatpush3.msra.mxu0 %v2043_v23  ;;  %1670 = vmatpush3.msra.mxu1 %v2106_v30 }
  0x2c   :  { %1692 = vmatprep.subr.mxu0 %v1906_v18  ;;  %1671 = vmatprep.subr.mxu1 %v1906_v18 }
  0x2d   :  { %1693 = vmatpush3.msra.mxu0 %v2052_v24  ;;  %1672 = vmatpush3.msra.mxu1 %v2113_v31 }
  0x2e   :  { %1694 = vmatprep.subr.mxu0 %v1906_v18  ;;  %1673 = vmatprep.subr.mxu1 %v1906_v18 }
  0x2f   :  { %1695 = vmatpush3.msra.mxu0 %v2061_v25  ;;  %1674 = vmatpush3.msra.mxu1 %v2121_v32 }
  0x30   :  { %1696 = vmatprep.subr.mxu0 %v1906_v18  ;;  %1675 = vmatprep.subr.mxu1 %v1906_v18 }
  0x31   :  { %1697 = vmatpush3.msra.mxu0 %v2070_v26  ;;  %1676 = vmatpush3.msra.mxu1 %v2130_v33 }
  0x32   :  { %1698 = vmatprep.subr.mxu0 %v1906_v18  ;;  %1677 = vmatprep.subr.mxu1 %v1906_v18 }
  0x33   :  { %1699 = vmatpush3.msra.mxu0 %v2079_v27  ;;  %1678 = vmatpush3.msra.mxu1 %v2139_v34 }
  0x34   :  { %1700 = vmatprep.subr.mxu0 %v1906_v18  ;;  %1714 = vmatprep.mubr.msk.f32.mxu0 %vm1907_vm1, %v1906_v18 }
  0x35   :  { %1701 = vmatpush3.msra.mxu0 %v2088_v28 }
  0x36   :  { %1702 = vmatprep.subr.mxu0 %v1906_v18 }
  0x37   :  { %1703 = vmatpush3.msra.mxu0 %v2097_v29 }
  0x38   :  { %1704 = vmatprep.subr.mxu0 %v1906_v18 }
  0x39   :  { %1705 = vmatpush3.msra.mxu0 %v2106_v30 }
  0x3a   :  { %1706 = vmatprep.subr.mxu0 %v1906_v18 }
  0x3b   :  { %1707 = vmatpush3.msra.mxu0 %v2113_v31 }
  0x3c   :  { %1708 = vmatprep.subr.mxu0 %v1906_v18 }
  0x3d   :  { %1709 = vmatpush3.msra.mxu0 %v2121_v32 }
  0x3e   :  { %1710 = vmatprep.subr.mxu0 %v1906_v18 }
  0x3f   :  { %1711 = vmatpush3.msra.mxu0 %v2130_v33 }
  0x40   :  { %1712 = vmatprep.subr.mxu0 %v1906_v18 }
  0x41   :  { %1713 = vmatpush3.msra.mxu0 %v2139_v34 }
  0xd2   :  { %v1621_v36 = vpop.f32.mrf.mxu0 }
  0xd3   :  { %v285_v48 = vrot.slane %v1621_v36, 7 }
  0xd4   :  { %v177_v38 = vpop.f32.mrf.mxu0  ;;  %v1633_v39 = vpop.f32.mrf.mxu1 }
  0xd5   :  { %v283_v52 = vrot.slane %v177_v38, 7  ;;  %v294_v55 = vrot.slane %v1633_v39, 1 }
  0xd6   :  { %v1622_v40 = vpop.f32.mrf.mxu0  ;;  %v268_v43 = vpop.f32.mrf.mxu1 }
  0xd7   :  { %v286_v49 = vrot.slane %v1622_v40, 7  ;;  %v292_v59 = vrot.slane %v268_v43, 1 }
  0xd8   :  { %v180_v42 = vpop.f32.mrf.mxu0  ;;  %v1634_v46 = vpop.f32.mrf.mxu1 }
  0xd9   :  { %v284_v44 = vrot.slane %v180_v42, 7  ;;  %v295_v56 = vrot.slane %v1634_v46, 1  ;;  %v291_v60 = vsel %vm287_vm2, %v286_v49, %v283_v52  ;;  %v288_v10 = vsel %vm287_vm2, %v285_v48, %v286_v49 }
  0xda   :  { %v271_v57 = vpop.f32.mrf.mxu1  ;;  %v309_v4 = vsel %vm2164_vm4, %v291_v60, 0.0 }
  0xdb   :  { %v289_v54 = vsel %vm287_vm2, %v284_v44, %v285_v48  ;;  %v293_v1 = vrot.slane %v271_v57, 1  ;;  %v297_v3 = vsel %vm296_vm5, %v294_v55, %v295_v56  ;;  %v300_v9 = vsel %vm296_vm5, %v295_v56, %v292_v59 }
  0xdc   :  { %v311_v62 = vsel %vm2158_vm3, %v289_v54, 0.0  ;;  %v397_v36 = vsel %vm2177_vm6, %v300_v9, 0.0  ;;  %v290_v38 = vsel %vm287_vm2, %v283_v52, %v284_v44 }
  0xdd   :  { %v299_v15 = vsel %vm296_vm5, %v292_v59, %v293_v1  ;;  %v298_v17 = vsel %vm296_vm5, %v293_v1, %v294_v55 }
  0xde   :  { %v395_v42 = vsel %vm2185_vm7, %v298_v17, 0.0 }
  0xe2   :  { %v1645_v63 = vpop.f32.mrf.mxu0 }
  0xe3   :  { %v380_v2 = vadd.f32 %v1645_v63, %v311_v62 }
  0xe4   :  { %v371_v5 = vpop.f32.mrf.mxu0 }
  0xe5   :  { %v372_v6 = vadd.f32 %v371_v5, %v309_v4  ;;  %v2189_v13 = vadd.f32 %v380_v2, %v297_v3 }
  0xe6   :  { %v1646_v11 = vpop.f32.mrf.mxu0 }
  0xe7   :  { %v383_v16 = vadd.f32 %v1646_v11, %v288_v10  ;;  %v2195_v35 = vadd.f32 %v372_v6, %v299_v15  ;;  %v418_v43 = vmul.f32 %v2189_v13, %v2189_v13 }
  0xe8   :  { %v374_v39 = vpop.f32.mrf.mxu0 }
  0xe9   :  { %v2201_v40 = vadd.f32 %v397_v36, %v383_v16  ;;  %v375_v41 = vadd.f32 %v374_v39, %v290_v38  ;;  %v416_v44 = vmul.f32 %v2195_v35, %v2195_v35 }
  0xeb   :  { %v409_v45 = vadd.f32 %v2201_v40, %v2189_v13  ;;  %v419_v46 = vmul.f32 %v2201_v40, %v2201_v40  ;;  %v2211_v47 = vadd.f32 %v395_v42, %v375_v41  ;;  %v1874_v41 = vld [vmem:[%s2476_s2 + $0x38] sm:$0xff]  }
  0xec   :  { %v1875_v42 = vld [vmem:[%s2476_s2 + $0xb8] sm:$0xff]   ;;  %1717 = vmatprep.subr.bf16.mxu1 %v1874_v41 }
  0xed   :  { %v410_v48 = vrot.slane %v409_v45, 4  ;;  %v427_v49 = vadd.f32 %v419_v46, %v418_v43  ;;  %v402_v50 = vadd.f32 %v2211_v47, %v2195_v35  ;;  %v417_v51 = vmul.f32 %v2211_v47, %v2211_v47  ;;  %1737 = vmatprep.subr.bf16.mxu0 %v1875_v42  ;;  %v1876_v43 = vld [vmem:[%s2476_s2 + $0x30] sm:$0xff]   ;;  %v1878_v46 = vld [vmem:[%s2476_s2 + $0x28] sm:$0xff]  }
  0xef   :  { %v411_v52 = vadd.f32 %v410_v48, %v409_v45  ;;  %v428_v54 = vrot.slane %v427_v49, 4  ;;  %v403_v55 = vrot.slane %v402_v50, 4  ;;  %v420_v56 = vadd.f32 %v417_v51, %v416_v44  ;;  %v1877_v45 = vld [vmem:[%s2476_s2 + $0xb0] sm:$0xff]   ;;  %v1879_v44 = vld [vmem:[%s2476_s2 + $0xa8] sm:$0xff]   ;;  %v1880_v48 = vld [vmem:[%s2476_s2 + $0x20] sm:$0xff]  }
  0xf0   :  { %v1883_v51 = vld [vmem:[%s2476_s2 + $0x98] sm:$0xff]  }
  0xf1   :  { %v412_v57 = vrot.slane %v411_v52, 2  ;;  %v429_v59 = vadd.f32 %v428_v54, %v427_v49  ;;  %v404_v60 = vadd.f32 %v403_v55, %v402_v50  ;;  %v421_v61 = vrot.slane %v420_v56, 4  ;;  %v1881_v49 = vld [vmem:[%s2476_s2 + $0xa0] sm:$0xff]   ;;  %v1882_v50 = vld [vmem:[%s2476_s2 + $0x18] sm:$0xff]   ;;  %v1885_v54 = vld [vmem:[%s2476_s2 + $0x90] sm:$0xff]  }
  0xf2   :  { %v1886_v55 = vld [vmem:[%s2476_s2 + $0x8] sm:$0xff]  }
  0xf3   :  { %v405_v62 = vrot.slane %v404_v60, 2  ;;  %v422_v63 = vadd.f32 %v421_v61, %v420_v56  ;;  %v413_v0 = vadd.f32 %v412_v57, %v411_v52  ;;  %v430_v1 = vrot.slane %v429_v59, 2  ;;  %v1884_v52 = vld [vmem:[%s2476_s2 + $0x10] sm:$0xff]   ;;  %v1887_v56 = vld [vmem:[%s2476_s2 + $0x88] sm:$0xff]   ;;  %v1888_v57 = vld [vmem:[%s2476_s2] sm:$0xff]  }
  0xf4   :  { %v1908_v61 = vmov 1966171168  }
  0xf5   :  { %v406_v2 = vadd.f32 %v405_v62, %v404_v60  ;;  %v414_v3 = vrot.slane %v413_v0, 1  ;;  %v423_v4 = vrot.slane %v422_v63, 2  ;;  %v431_v5 = vadd.f32 %v430_v1, %v429_v59  ;;  %v1889_v59 = vld [vmem:[%s2476_s2 + $0x80] sm:$0xff]   ;;  %v1890_v60 = vld [vmem:[%s2476_s2 + $0x78] sm:$0xff]  }
  0xf6   :  { %v590_v62 = vunpack.c.l.s4 %v1908_v61 }
  0xf7   :  { %v407_v6 = vrot.slane %v406_v2, 1  ;;  %v424_v9 = vadd.f32 %v423_v4, %v422_v63  ;;  %v432_v10 = vrot.slane %v431_v5, 1  ;;  %v415_v15 = vadd.f32 %v414_v3, %v413_v0 }
  0xf8   :  { %v591_v4 = vunpack.c.0.s8 %v590_v62 }
  0xf9   :  { %v408_v11 = vadd.f32 %v407_v6, %v406_v2  ;;  %v425_v16 = vrot.slane %v424_v9, 1  ;;  %v433_v38 = vadd.f32 %v432_v10, %v431_v5 }
  0xfa   :  { %v2274_v10 = vsub.s32 %v591_v4, %v2151_v37 }
  0xfb   :  { %v437_v17 = vsel %vm436_vm8, %v415_v15, %v408_v11  ;;  %v426_v36 = vadd.f32 %v425_v16, %v424_v9 }
  0xfc   :  { %1680 = vmatmul.mubr.f32.vlgmr.msra.gmra.mxu1 %v437_v17  ;;  %v2279_v17 = vsub.s32 0, %v2151_v37 }
  0xfd   :  { %v511_v39 = vsel %vm436_vm8, %v433_v38, %v426_v36  ;;  %1718 = vmatpush3.bf16.msra.mxu1 %v1874_v41 }
  0xfe   :  { %1715 = vmatmul.mubr.f32.vlgmr.msra.gmra.mxu0 %v511_v39  ;;  %1719 = vmatprep.subr.bf16.mxu1 %v1876_v43 }
  0xff   :  { %1738 = vmatpush3.bf16.msra.mxu0 %v1875_v42 }
 0x100   :  { %1739 = vmatprep.subr.bf16.mxu0 %v1877_v45 }
 0x101   :  { %1720 = vmatpush3.bf16.msra.mxu1 %v1876_v43 }
 0x102   :  { %1721 = vmatprep.subr.bf16.mxu1 %v1878_v46 }
 0x103   :  { %1740 = vmatpush3.bf16.msra.mxu0 %v1877_v45 }
 0x104   :  { %1741 = vmatprep.subr.bf16.mxu0 %v1879_v44 }
 0x105   :  { %1722 = vmatpush3.bf16.msra.mxu1 %v1878_v46 }
 0x106   :  { %1723 = vmatprep.subr.bf16.mxu1 %v1880_v48 }
 0x107   :  { %1742 = vmatpush3.bf16.msra.mxu0 %v1879_v44 }
 0x108   :  { %1743 = vmatprep.subr.bf16.mxu0 %v1881_v49 }
 0x109   :  { %1724 = vmatpush3.bf16.msra.mxu1 %v1880_v48 }
 0x10a   :  { %1725 = vmatprep.subr.bf16.mxu1 %v1882_v50 }
 0x10b   :  { %1744 = vmatpush3.bf16.msra.mxu0 %v1881_v49 }
 0x10c   :  { %1745 = vmatprep.subr.bf16.mxu0 %v1883_v51 }
 0x10d   :  { %1726 = vmatpush3.bf16.msra.mxu1 %v1882_v50 }
 0x10e   :  { %1727 = vmatprep.subr.bf16.mxu1 %v1884_v52 }
 0x10f   :  { %1746 = vmatpush3.bf16.msra.mxu0 %v1883_v51 }
 0x110   :  { %1747 = vmatprep.subr.bf16.mxu0 %v1885_v54 }
 0x111   :  { %1728 = vmatpush3.bf16.msra.mxu1 %v1884_v52 }
 0x112   :  { %1729 = vmatprep.subr.bf16.mxu1 %v1886_v55 }
 0x113   :  { %1748 = vmatpush3.bf16.msra.mxu0 %v1885_v54 }
 0x114   :  { %1749 = vmatprep.subr.bf16.mxu0 %v1887_v56 }
 0x115   :  { %1730 = vmatpush3.bf16.msra.mxu1 %v1886_v55 }
 0x116   :  { %1731 = vmatprep.subr.bf16.mxu1 %v1888_v57 }
 0x117   :  { %1750 = vmatpush3.bf16.msra.mxu0 %v1887_v56 }
 0x118   :  { %1751 = vmatprep.subr.bf16.mxu0 %v1889_v59 }
 0x119   :  { %1732 = vmatpush3.bf16.msra.mxu1 %v1888_v57 }
 0x11a   :  { %1757 = vmatprep.subr.bf16.mxu1 %v1890_v60 }
 0x11b   :  { %1752 = vmatpush3.bf16.msra.mxu0 %v1889_v59 }
 0x11c   :  { %1777 = vmatprep.subr.mxu0 %v1906_v18 }
 0x1bc   :  { %v505_v63 = vpop.f32.mrf.mxu1 }
 0x1bd   :  { %v583_v0 = vmul.f32 %v505_v63, %v505_v63  ;;  %v595_v11 = vrot.slane %v505_v63, %v2274_v10 }
 0x1be   :  { %v1681_v1 = vpop.f32.mrf.mxu1  ;;  %v579_v2 = vpop.f32.mrf.mxu0 }
 0x1bf   :  { %v584_v3 = vsub.f32 %v579_v2, %v583_v0  ;;  %v596_v15 = vcombine.high %v595_v11, %v595_v11  ;;  %v603_v16 = vrot.slane %v595_v11, %v2274_v10  ;;  %v1894_v0 = vld [vmem:[%s2476_s2 + $0x58] sm:$0xff]   ;;  %v1895_v1 = vld [vmem:[%s2476_s2 + $0x50] sm:$0xff]   ;;  %v1896_v2 = vld [vmem:[%s2476_s2 + $0x48] sm:$0xff]  }
 0x1c0   :  { %v1716_v5 = vpop.f32.mrf.mxu0 }
 0x1c1   :  { %v585_v6 = vmax.f32 %v584_v3, 0.0  ;;  %v610_v36 = vrot.slane %v596_v15, %v2274_v10  ;;  %v614_v39 = vrot.slane %v603_v16, %v2279_v17  ;;  %v1897_v3 = vld [vmem:[%s2476_s2 + $0x40] sm:$0xff]  }
 0x1c3   :  { %v586_v9 = vadd.f32 1e-05, %v585_v6  ;;  %v618_v42 = vrot.slane %v610_v36, %v2279_v17  ;;  %v621_v46 = vsub.f32 %v2195_v35, %v614_v39  ;;  %v622_v44 = vsub.f32 %v2211_v47, %v614_v39 }
 0x1c5   :  { %1902 = vrsqrt.f32 %v586_v9  ;;  %v623_v50 = vsub.f32 %v2189_v13, %v618_v42  ;;  %v624_v51 = vsub.f32 %v2201_v40, %v618_v42  ;;  %v1891_v13 = vld [vmem:[%s2476_s2 + $0x70] sm:$0xff]   ;;  %v1892_v40 = vld [vmem:[%s2476_s2 + $0x68] sm:$0xff]  }
 0x1d2   :  { %v1903_v38 = vpop.eup %1902 }
 0x1d3   :  { %v632_v41 = vrot.slane %v1903_v38, %v2274_v10 }
 0x1d5   :  { %v633_v43 = vcombine.high %v632_v41, %v632_v41  ;;  %v640_v45 = vrot.slane %v632_v41, %v2274_v10 }
 0x1d7   :  { %v651_v48 = vrot.slane %v640_v45, %v2279_v17  ;;  %v647_v49 = vrot.slane %v633_v43, %v2274_v10 }
 0x1d9   :  { %v658_v52 = vmul.f32 %v651_v48, %v621_v46  ;;  %v659_v54 = vmul.f32 %v651_v48, %v622_v44  ;;  %v655_v55 = vrot.slane %v647_v49, %v2279_v17 }
 0x1db   :  { %v662_v56 = vmax.f32 %v658_v52, 0.0  ;;  %v663_v57 = vmax.f32 %v659_v54, 0.0  ;;  %v660_v59 = vmul.f32 %v655_v55, %v623_v50  ;;  %v661_v61 = vmul.f32 %v655_v55, %v624_v51 }
 0x1dd   :  { %v666_v62 = vpack.c.bf16 %v663_v57, %v662_v56  ;;  %v664_v35 = vmax.f32 %v660_v59, 0.0  ;;  %v665_v63 = vmax.f32 %v661_v61, 0.0 }
 0x1df   :  { %1733 = vmatprep.mubr.bf16.mxu1 %v666_v62  ;;  %1753 = vmatprep.mubr.bf16.mxu0 %v666_v62  ;;  %v667_v47 = vpack.c.bf16 %v665_v63, %v664_v35 }
 0x1e1   :  { %1734 = vmatmul.mubr.bf16.vlgmr.msra.gmra.mxu1 %v667_v47  ;;  %1754 = vmatmul.mubr.bf16.vlgmr.msra.gmra.mxu0 %v667_v47 }
 0x1e2   :  { %1758 = vmatpush3.bf16.msra.mxu1 %v1890_v60  ;;  %1773 = vmatprep.mubr.bf16.mxu1 %v666_v62  ;;  %v1893_v60 = vld [vmem:[%s2476_s2 + $0x60] sm:$0xff]  }
 0x1e3   :  { %1759 = vmatprep.subr.bf16.mxu1 %v1891_v13  ;;  %1778 = vmatpush3.msra.mxu0 %v2007_v19 }
 0x1e4   :  { %1779 = vmatprep.subr.mxu0 %v1906_v18  ;;  %1809 = vmatprep.mubr.msk.f32.mxu0 %vm1907_vm1, %v1906_v18 }
 0x1e5   :  { %1780 = vmatpush3.msra.mxu0 %v2013_v20 }
 0x1e6   :  { %1760 = vmatpush3.bf16.msra.mxu1 %v1891_v13  ;;  %1781 = vmatprep.subr.mxu0 %v1906_v18 }
 0x1e7   :  { %1761 = vmatprep.subr.bf16.mxu1 %v1892_v40  ;;  %1782 = vmatpush3.msra.mxu0 %v2022_v21 }
 0x1e8   :  { %1783 = vmatprep.subr.mxu0 %v1906_v18 }
 0x1e9   :  { %1784 = vmatpush3.msra.mxu0 %v2035_v22 }
 0x1ea   :  { %1762 = vmatpush3.bf16.msra.mxu1 %v1892_v40  ;;  %1785 = vmatprep.subr.mxu0 %v1906_v18 }
 0x1eb   :  { %1763 = vmatprep.subr.bf16.mxu1 %v1893_v60  ;;  %1786 = vmatpush3.msra.mxu0 %v2043_v23 }
 0x1ec   :  { %1787 = vmatprep.subr.mxu0 %v1906_v18 }
 0x1ed   :  { %1788 = vmatpush3.msra.mxu0 %v2052_v24 }
 0x1ee   :  { %1764 = vmatpush3.bf16.msra.mxu1 %v1893_v60  ;;  %1789 = vmatprep.subr.mxu0 %v1906_v18 }
 0x1ef   :  { %1765 = vmatprep.subr.bf16.mxu1 %v1894_v0  ;;  %1790 = vmatpush3.msra.mxu0 %v2061_v25 }
 0x1f0   :  { %1791 = vmatprep.subr.mxu0 %v1906_v18 }
 0x1f1   :  { %1792 = vmatpush3.msra.mxu0 %v2070_v26 }
 0x1f2   :  { %1766 = vmatpush3.bf16.msra.mxu1 %v1894_v0  ;;  %1793 = vmatprep.subr.mxu0 %v1906_v18 }
 0x1f3   :  { %1767 = vmatprep.subr.bf16.mxu1 %v1895_v1  ;;  %1794 = vmatpush3.msra.mxu0 %v2079_v27 }
 0x1f4   :  { %1795 = vmatprep.subr.mxu0 %v1906_v18 }
 0x1f5   :  { %1796 = vmatpush3.msra.mxu0 %v2088_v28 }
 0x1f6   :  { %1768 = vmatpush3.bf16.msra.mxu1 %v1895_v1  ;;  %1797 = vmatprep.subr.mxu0 %v1906_v18 }
 0x1f7   :  { %1769 = vmatprep.subr.bf16.mxu1 %v1896_v2  ;;  %1798 = vmatpush3.msra.mxu0 %v2097_v29 }
 0x1f8   :  { %1799 = vmatprep.subr.mxu0 %v1906_v18 }
 0x1f9   :  { %1800 = vmatpush3.msra.mxu0 %v2106_v30 }
 0x1fa   :  { %1770 = vmatpush3.bf16.msra.mxu1 %v1896_v2  ;;  %1801 = vmatprep.subr.mxu0 %v1906_v18 }
 0x1fb   :  { %1771 = vmatprep.subr.bf16.mxu1 %v1897_v3  ;;  %1802 = vmatpush3.msra.mxu0 %v2113_v31 }
 0x1fc   :  { %1803 = vmatprep.subr.mxu0 %v1906_v18 }
 0x1fd   :  { %1804 = vmatpush3.msra.mxu0 %v2121_v32 }
 0x1fe   :  { %1772 = vmatpush3.bf16.msra.mxu1 %v1897_v3  ;;  %1805 = vmatprep.subr.mxu0 %v1906_v18 }
 0x1ff   :  { %1812 = vmatprep.subr.mxu1 %v1906_v18  ;;  %1806 = vmatpush3.msra.mxu0 %v2130_v33 }
 0x200   :  { %1807 = vmatprep.subr.mxu0 %v1906_v18 }
 0x201   :  { %1774 = vmatmul.mubr.bf16.vlgmr.msra.gmra.mxu1 %v667_v47  ;;  %1808 = vmatpush3.msra.mxu0 %v2139_v34 }
 0x202   :  { %1813 = vmatpush3.msra.mxu1 %v2007_v19  ;;  %1844 = vmatprep.mubr.msk.f32.mxu1 %vm1907_vm1, %v1906_v18  ;;  %v2384_v19 = vld [vmem:[%s2477_s4 + $0x18] sm:$0xff]  }
 0x203   :  { %1814 = vmatprep.subr.mxu1 %v1906_v18  ;;  %1847 = vmatprep.subr.bf16.mxu0 %v2384_v19 }
 0x204   :  { %1815 = vmatpush3.msra.mxu1 %v2013_v20 }
 0x205   :  { %1816 = vmatprep.subr.mxu1 %v1906_v18 }
 0x206   :  { %1817 = vmatpush3.msra.mxu1 %v2022_v21 }
 0x207   :  { %1818 = vmatprep.subr.mxu1 %v1906_v18 }
 0x208   :  { %1819 = vmatpush3.msra.mxu1 %v2035_v22 }
 0x209   :  { %1820 = vmatprep.subr.mxu1 %v1906_v18 }
 0x20a   :  { %1821 = vmatpush3.msra.mxu1 %v2043_v23 }
 0x20b   :  { %1822 = vmatprep.subr.mxu1 %v1906_v18 }
 0x20c   :  { %1823 = vmatpush3.msra.mxu1 %v2052_v24 }
 0x20d   :  { %1824 = vmatprep.subr.mxu1 %v1906_v18 }
 0x20e   :  { %1825 = vmatpush3.msra.mxu1 %v2061_v25 }
 0x20f   :  { %1826 = vmatprep.subr.mxu1 %v1906_v18 }
 0x210   :  { %1827 = vmatpush3.msra.mxu1 %v2070_v26 }
 0x211   :  { %1828 = vmatprep.subr.mxu1 %v1906_v18 }
 0x212   :  { %1829 = vmatpush3.msra.mxu1 %v2079_v27 }
 0x213   :  { %1830 = vmatprep.subr.mxu1 %v1906_v18 }
 0x214   :  { %1831 = vmatpush3.msra.mxu1 %v2088_v28 }
 0x215   :  { %1832 = vmatprep.subr.mxu1 %v1906_v18 }
 0x216   :  { %1833 = vmatpush3.msra.mxu1 %v2097_v29 }
 0x217   :  { %1834 = vmatprep.subr.mxu1 %v1906_v18 }
 0x218   :  { %1835 = vmatpush3.msra.mxu1 %v2106_v30 }
 0x219   :  { %1836 = vmatprep.subr.mxu1 %v1906_v18 }
 0x21a   :  { %1837 = vmatpush3.msra.mxu1 %v2113_v31 }
 0x21b   :  { %1838 = vmatprep.subr.mxu1 %v1906_v18 }
 0x21c   :  { %1839 = vmatpush3.msra.mxu1 %v2121_v32 }
 0x21d   :  { %1840 = vmatprep.subr.mxu1 %v1906_v18 }
 0x21e   :  { %1841 = vmatpush3.msra.mxu1 %v2130_v33 }
 0x21f   :  { %1842 = vmatprep.subr.mxu1 %v1906_v18 }
 0x220   :  { %1843 = vmatpush3.msra.mxu1 %v2139_v34 }
 0x2a1   :  { %v1735_v20 = vpop.f32.mrf.mxu1  ;;  %v1755_v22 = vpop.f32.mrf.mxu0 }
 0x2a2   :  { %v914_v28 = vrot.slane %v1735_v20, 7  ;;  %v922_v11 = vrot.slane %v1755_v22, 1 }
 0x2a3   :  { %v766_v21 = vpop.f32.mrf.mxu1  ;;  %v897_v24 = vpop.f32.mrf.mxu0 }
 0x2a4   :  { %v912_v18 = vrot.slane %v766_v21, 7  ;;  %v920_v5 = vrot.slane %v897_v24, 1 }
 0x2a5   :  { %v1736_v23 = vpop.f32.mrf.mxu1  ;;  %v1756_v27 = vpop.f32.mrf.mxu0 }
 0x2a6   :  { %v915_v29 = vrot.slane %v1736_v23, 7  ;;  %v923_v32 = vrot.slane %v1756_v27, 1 }
 0x2a7   :  { %v769_v25 = vpop.f32.mrf.mxu1  ;;  %v900_v31 = vpop.f32.mrf.mxu0 }
 0x2a8   :  { %v913_v26 = vrot.slane %v769_v25, 7  ;;  %v919_v33 = vsel %vm287_vm2, %v915_v29, %v912_v18  ;;  %v921_v6 = vrot.slane %v900_v31, 1  ;;  %v927_v38 = vsel %vm296_vm5, %v923_v32, %v920_v5 }
 0x2a9   :  { %v928_v15 = vsel %vm2164_vm4, %v919_v33, 0.0  ;;  %v924_v39 = vsel %vm296_vm5, %v922_v11, %v923_v32  ;;  %v916_v53 = vsel %vm287_vm2, %v914_v28, %v915_v29  ;;  %v1032_v44 = vsel %vm2177_vm6, %v927_v38, 0.0 }
 0x2aa   :  { %v917_v30 = vsel %vm287_vm2, %v913_v26, %v914_v28  ;;  %v926_v43 = vsel %vm296_vm5, %v920_v5, %v921_v6  ;;  %v925_v58 = vsel %vm296_vm5, %v921_v6, %v922_v11  ;;  %v918_v48 = vsel %vm287_vm2, %v912_v18, %v913_v26  ;;  %v1901_v5 = vld [vmem:[%s2477_s4] sm:$0xff]  }
 0x2ab   :  { %v930_v34 = vsel %vm2158_vm3, %v917_v30, 0.0  ;;  %v1030_v52 = vsel %vm2185_vm7, %v925_v58, 0.0  ;;  %v1899_v30 = vld [vmem:[%s2477_s4 + $0x10] sm:$0xff]  }
 0x2c1   :  { %v1775_v4 = vpop.f32.mrf.mxu1 }
 0x2c2   :  { %v1023_v9 = vadd.f32 %v1775_v4, %v930_v34  ;;  %v1900_v4 = vld [vmem:[%s2477_s4 + $0x8] sm:$0xff]  }
 0x2c3   :  { %v1014_v16 = vpop.f32.mrf.mxu1 }
 0x2c4   :  { %v1015_v36 = vadd.f32 %v1014_v16, %v928_v15  ;;  %v2401_v42 = vadd.f32 %v1023_v9, %v924_v39 }
 0x2c5   :  { %v1776_v41 = vpop.f32.mrf.mxu1 }
 0x2c6   :  { %v1026_v45 = vadd.f32 %v1776_v41, %v916_v53  ;;  %v2407_v46 = vadd.f32 %v1015_v36, %v926_v43  ;;  %v1053_v54 = vmul.f32 %v2401_v42, %v2401_v42 }
 0x2c7   :  { %v1017_v49 = vpop.f32.mrf.mxu1 }
 0x2c8   :  { %v2413_v50 = vadd.f32 %v1032_v44, %v1026_v45  ;;  %v1018_v51 = vadd.f32 %v1017_v49, %v918_v48  ;;  %v1051_v37 = vmul.f32 %v2407_v46, %v2407_v46 }
 0x2ca   :  { %v1044_v55 = vadd.f32 %v2413_v50, %v2401_v42  ;;  %v1054_v7 = vmul.f32 %v2413_v50, %v2413_v50  ;;  %v2423_v56 = vadd.f32 %v1030_v52, %v1018_v51 }
 0x2cc   :  { %v1045_v57 = vrot.slane %v1044_v55, 4  ;;  %v1062_v59 = vadd.f32 %v1054_v7, %v1053_v54  ;;  %v1037_v12 = vadd.f32 %v2423_v56, %v2407_v46  ;;  %v1052_v61 = vmul.f32 %v2423_v56, %v2423_v56 }
 0x2ce   :  { %v1046_v62 = vadd.f32 %v1045_v57, %v1044_v55  ;;  %v1063_v35 = vrot.slane %v1062_v59, 4  ;;  %v1038_v63 = vrot.slane %v1037_v12, 4  ;;  %v1055_v47 = vadd.f32 %v1052_v61, %v1051_v37 }
 0x2d0   :  { %v1047_v13 = vrot.slane %v1046_v62, 2  ;;  %v1064_v40 = vadd.f32 %v1063_v35, %v1062_v59  ;;  %v1039_v60 = vadd.f32 %v1038_v63, %v1037_v12  ;;  %v1056_v0 = vrot.slane %v1055_v47, 4 }
 0x2d2   :  { %v1040_v1 = vrot.slane %v1039_v60, 2  ;;  %v1057_v2 = vadd.f32 %v1056_v0, %v1055_v47  ;;  %v1048_v3 = vadd.f32 %v1047_v13, %v1046_v62  ;;  %v1065_v20 = vrot.slane %v1064_v40, 2 }
 0x2d4   :  { %v1041_v21 = vadd.f32 %v1040_v1, %v1039_v60  ;;  %v1049_v22 = vrot.slane %v1048_v3, 1  ;;  %v1058_v23 = vrot.slane %v1057_v2, 2  ;;  %v1066_v24 = vadd.f32 %v1065_v20, %v1064_v40 }
 0x2d6   :  { %v1042_v25 = vrot.slane %v1041_v21, 1  ;;  %v1059_v26 = vadd.f32 %v1058_v23, %v1057_v2  ;;  %v1067_v27 = vrot.slane %v1066_v24, 1  ;;  %v1050_v29 = vadd.f32 %v1049_v22, %v1048_v3 }
 0x2d8   :  { %v1043_v28 = vadd.f32 %v1042_v25, %v1041_v21  ;;  %v1060_v18 = vrot.slane %v1059_v26, 1  ;;  %v1068_v33 = vadd.f32 %v1067_v27, %v1066_v24 }
 0x2da   :  { %v1071_v31 = vsel %vm436_vm8, %v1050_v29, %v1043_v28  ;;  %v1061_v32 = vadd.f32 %v1060_v18, %v1059_v26 }
 0x2db   :  { %1810 = vmatmul.mubr.f32.vlgmr.msra.gmra.mxu0 %v1071_v31 }
 0x2dc   :  { %v1145_v34 = vsel %vm436_vm8, %v1068_v33, %v1061_v32  ;;  %1848 = vmatpush3.bf16.msra.mxu0 %v2384_v19  ;;  %1855 = vmatprep.mubr.msk.bf16.mxu0 %vm136_vm0, %v1963_v8 }
 0x2dd   :  { %1845 = vmatmul.mubr.f32.vlgmr.msra.gmra.mxu1 %v1145_v34  ;;  %1849 = vmatprep.subr.bf16.mxu0 %v1899_v30 }
 0x2e0   :  { %1850 = vmatpush3.bf16.msra.mxu0 %v1899_v30 }
 0x2e1   :  { %1851 = vmatprep.subr.bf16.mxu0 %v1900_v4 }
 0x2e4   :  { %1852 = vmatpush3.bf16.msra.mxu0 %v1900_v4 }
 0x2e5   :  { %1853 = vmatprep.subr.bf16.mxu0 %v1901_v5 }
 0x2e8   :  { %1854 = vmatpush3.bf16.msra.mxu0 %v1901_v5 }
 0x2eb   :  { %1856 = vmatmul.mubr.msk.bf16.vlgmr.msra.gmra.mxu0 %vm136_vm0, %v1984_v14 }
 0x39b   :  { %v1139_v19 = vpop.f32.mrf.mxu0 }
 0x39c   :  { %v1217_v8 = vmul.f32 %v1139_v19, %v1139_v19  ;;  %v1229_v38 = vrot.slane %v1139_v19, %v2274_v10 }
 0x39d   :  { %v1811_v6 = vpop.f32.mrf.mxu0  ;;  %v1213_v9 = vpop.f32.mrf.mxu1 }
 0x39e   :  { %v1218_v11 = vsub.f32 %v1213_v9, %v1217_v8  ;;  %v1230_v39 = vcombine.high %v1229_v38, %v1229_v38  ;;  %v1237_v41 = vrot.slane %v1229_v38, %v2274_v10 }
 0x39f   :  { %v1846_v15 = vpop.f32.mrf.mxu1 }
 0x3a0   :  { %v1219_v16 = vmax.f32 %v1218_v11, 0.0  ;;  %v1244_v43 = vrot.slane %v1230_v39, %v2274_v10  ;;  %v1248_v14 = vrot.slane %v1237_v41, %v2279_v17 }
 0x3a2   :  { %v1220_v36 = vadd.f32 1e-05, %v1219_v16  ;;  %v1252_v48 = vrot.slane %v1244_v43, %v2279_v17  ;;  %v1255_v55 = vsub.f32 %v2407_v46, %v1248_v14  ;;  %v1256_v37 = vsub.f32 %v2423_v56, %v1248_v14 }
 0x3a4   :  { %1904 = vrsqrt.f32 %v1220_v36  ;;  %v1257_v57 = vsub.f32 %v2401_v42, %v1252_v48  ;;  %v1258_v61 = vsub.f32 %v2413_v50, %v1252_v48 }
 0x3ab   :  { %v1857_v53 = vpop.f32.mrf.mxu0 }
 0x3ad   :  { %v1362_v58 = vpop.f32.mrf.mxu0 }
 0x3af   :  { %v1858_v52 = vpop.f32.mrf.mxu0 }
 0x3b1   :  { %v1905_v45 = vpop.eup %1904  ;;  %v1365_v35 = vpop.f32.mrf.mxu0 }
 0x3b2   :  { %v1266_v44 = vrot.slane %v1905_v45, %v2274_v10 }
 0x3b4   :  { %v1267_v49 = vcombine.high %v1266_v44, %v1266_v44  ;;  %v1274_v51 = vrot.slane %v1266_v44, %v2274_v10 }
 0x3b6   :  { %v1281_v54 = vrot.slane %v1267_v49, %v2274_v10  ;;  %v1285_v7 = vrot.slane %v1274_v51, %v2279_v17 }
 0x3b8   :  { %v1289_v59 = vrot.slane %v1281_v54, %v2279_v17  ;;  %v1292_v12 = vmul.f32 %v1285_v7, %v1255_v55  ;;  %v1293_v62 = vmul.f32 %v1285_v7, %v1256_v37 }
 0x3ba   :  { %v1294_v63 = vmul.f32 %v1289_v59, %v1257_v57  ;;  %v1377_v47 = vadd.f32 %v1362_v58, %v1292_v12  ;;  %v1295_v13 = vmul.f32 %v1289_v59, %v1258_v61  ;;  %v1378_v40 = vadd.f32 %v1365_v35, %v1293_v62 }
 0x3bc   :  { %v1379_v10 = vadd.f32 %v1857_v53, %v1294_v63  ;;  %v1381_v60 = vmax.f32 %v1377_v47, 0.0  ;;  %v1380_v46 = vadd.f32 %v1858_v52, %v1295_v13  ;;  %v1382_v0 = vmax.f32 %v1378_v40, 0.0 }
 0x3be   :  { %v1383_v1 = vmax.f32 %v1379_v10, 0.0  ;;  %1385 = vst [vmem:[%s2478_s5] sm:$0xff] %v1381_v60  ;;  %v1384_v42 = vmax.f32 %v1380_v46, 0.0  ;;  %1386 = vst [vmem:[%s2478_s5 + $0x8] sm:$0xff] %v1382_v0 }
 0x3c0   :  { %1387 = vst [vmem:[%s2478_s5 + $0x10] sm:$0xff] %v1383_v1  ;;  %1388 = vst [vmem:[%s2478_s5 + $0x18] sm:$0xff] %v1384_v42 }

</bundles_post_ra>
